<compile_context>
chip_gen: v5e
topology: v5e:2x2
jax: 0.10.0
libtpu: 0.0.40
codegen_flags: <defaults>
</compile_context>

<pallas_src>
import math
import functools

import jax
import jax.numpy as jnp
from jax import lax
from jax.experimental import pallas as pl
from jax.experimental.pallas import tpu as pltpu


def cross_attention_kernel(x_ref, adj_ref, wq_ref, bq_ref, wk_ref, bk_ref,
                           wv_ref, bv_ref, wo_ref, bo_ref, o_ref,
                           k_scr, v_scr, *, n_heads, d_head):
    # x_ref:  (TQ, H) bf16      adj_ref: (Lk, E) bf16
    # wq_ref: (H, H) bf16 (pre-scaled by 1/sqrt(d_head))   wk/wv: (E, H) bf16
    # wo_ref: (H, H) bf16       biases: (1, H) f32 (bq pre-scaled)
    # o_ref:  (TQ, H) f32       k_scr/v_scr: (Lk, H) bf16 scratch
    qi = pl.program_id(1)

    # K/V projections: once per batch element. The q-tile grid axis is
    # "arbitrary", so qi == 0 runs before all other q-tiles of this batch on
    # the same core and the scratch stays resident across them.
    @pl.when(qi == 0)
    def _():
        adj = adj_ref[...]
        k = jnp.dot(adj, wk_ref[...], preferred_element_type=jnp.float32) + bk_ref[...]
        v = jnp.dot(adj, wv_ref[...], preferred_element_type=jnp.float32) + bv_ref[...]
        k_scr[...] = k.astype(k_scr.dtype)
        v_scr[...] = v.astype(v_scr.dtype)

    # Q projection for this q-tile (scale already folded into wq/bq).
    q = (jnp.dot(x_ref[...], wq_ref[...], preferred_element_type=jnp.float32)
         + bq_ref[...]).astype(jnp.bfloat16)                     # (TQ, H)

    k = k_scr[...]                                               # (Lk, H) bf16
    v = v_scr[...]                                               # (Lk, H) bf16
    wo = wo_ref[...]                                             # (H, H)  bf16

    acc = jnp.zeros(o_ref.shape, jnp.float32)                    # (TQ, H)
    dims = (((1,), (1,)), ((), ()))   # contract last dims, no batch dims
    for h in range(n_heads):          # static unrolled loop over heads
        sl = slice(h * d_head, (h + 1) * d_head)
        qh = q[:, sl]                 # (TQ, dh) bf16
        kh = k[:, sl]                 # (Lk, dh) bf16
        vh = v[:, sl]                 # (Lk, dh) bf16

        # Scores in f32; no explicit transpose of kh.
        s = lax.dot_general(qh, kh, dims, preferred_element_type=jnp.float32)
        m = jnp.max(s, axis=-1, keepdims=True)
        p = jnp.exp(s - m)                                   # unnormalized, f32
        row_sum = jnp.sum(p, axis=-1, keepdims=True)         # (TQ, 1) f32
        # TODO(synk): nn.Dropout(p=0.1) on attention weights is identity in
        # eval mode; training-mode dropout is not implemented.
        oh = jnp.dot(p.astype(jnp.bfloat16), vh,
                     preferred_element_type=jnp.float32)     # (TQ, dh) f32
        oh = oh * pl.reciprocal(row_sum, approx=True)        # normalize post-PV
        # Stream this head straight into the output projection (no concat).
        acc = acc + jnp.dot(oh.astype(jnp.bfloat16), wo[sl, :],
                            preferred_element_type=jnp.float32)

    o_ref[...] = (acc + bo_ref[...]).astype(o_ref.dtype)


def _pick_q_tile(lq):
    """Largest convenient q-tile that evenly divides Lq (keeps VMEM bounded)."""
    for cand in (512, 256, 128):
        if lq % cand == 0:
            return cand
    return lq  # full length is always legal for the (8,128) block rule


def cross_attention(x, adj, params, n_heads):
    """x: (B, T, S, n_hidden); adj: (B, ..., n_embd); params pre-transposed (in,out)."""
    B, T, S, H = x.shape
    Lq = T * S
    d_head = H // n_heads
    x_flat = x.reshape(B, Lq, H).astype(jnp.bfloat16)
    adj_flat = adj.reshape(B, -1, adj.shape[-1]).astype(jnp.bfloat16)
    Lk, E = adj_flat.shape[1], adj_flat.shape[2]

    wq, bq, wk, bk, wv, bv, wo, bo = params
    scale = 1.0 / math.sqrt(d_head)
    # Fold the 1/sqrt(d_head) softmax scale into the q projection once.
    wq_s = (wq * scale).astype(jnp.bfloat16)
    bq_s = (bq * scale).astype(jnp.float32)
    wk_b = wk.astype(jnp.bfloat16)
    wv_b = wv.astype(jnp.bfloat16)
    wo_b = wo.astype(jnp.bfloat16)
    bk_f = bk.astype(jnp.float32)
    bv_f = bv.astype(jnp.float32)
    bo_f = bo.astype(jnp.float32)

    TQ = _pick_q_tile(Lq)
    n_q = Lq // TQ

    kernel = functools.partial(cross_attention_kernel,
                               n_heads=n_heads, d_head=d_head)

    w_spec = lambda shape: pl.BlockSpec(shape, lambda b, qi: (0, 0))
    out = pl.pallas_call(
        kernel,
        out_shape=jax.ShapeDtypeStruct((B, Lq, H), jnp.float32),
        grid=(B, n_q),
        in_specs=[
            pl.BlockSpec((None, TQ, H), lambda b, qi: (b, qi, 0)),  # x q-tile
            pl.BlockSpec((None, Lk, E), lambda b, qi: (b, 0, 0)),   # adj (per batch)
            w_spec((H, H)),  # wq (pre-scaled)
            w_spec((1, H)),  # bq (pre-scaled)
            w_spec((E, H)),  # wk
            w_spec((1, H)),  # bk
            w_spec((E, H)),  # wv
            w_spec((1, H)),  # bv
            w_spec((H, H)),  # wo
            w_spec((1, H)),  # bo
        ],
        out_specs=pl.BlockSpec((None, TQ, H), lambda b, qi: (b, qi, 0)),
        scratch_shapes=[pltpu.VMEM((Lk, H), jnp.bfloat16),   # K (per batch)
                        pltpu.VMEM((Lk, H), jnp.bfloat16)],  # V (per batch)
        compiler_params=pltpu.CompilerParams(
            dimension_semantics=("parallel", "arbitrary"),
            vmem_limit_bytes=64 * 1024 * 1024),
    )(x_flat, adj_flat, wq_s, bq_s, wk_b, bk_f, wv_b, bv_f, wo_b, bo_f)

    return out.reshape(B, T, S, H)


def cross_attention_reference(x, adj, wq, bq, wk, bk, wv, bv, wo, bo, n_heads):
    """Plain-JAX f32 mirror of the PyTorch forward (eval mode) for verification."""
    B, T, S, H = x.shape
    d_head = H // n_heads
    q = jnp.einsum('btse,oe->btso', x, wq) + bq          # torch Linear: x @ W.T + b
    k = jnp.einsum('b...e,oe->b...o', adj, wk) + bk
    v = jnp.einsum('b...e,oe->b...o', adj, wv) + bv
    q = q.reshape(B, -1, n_heads, d_head).transpose(0, 2, 1, 3)
    k = k.reshape(B, -1, n_heads, d_head).transpose(0, 2, 1, 3)
    v = v.reshape(B, -1, n_heads, d_head).transpose(0, 2, 1, 3)
    w = jnp.einsum('bhqd,bhkd->bhqk', q, k) / math.sqrt(d_head)
    w = jax.nn.softmax(w, axis=-1)
    o = jnp.einsum('bhqk,bhkd->bhqd', w, v)
    o = o.transpose(0, 2, 1, 3).reshape(B, T, S, H)
    return jnp.einsum('btsh,oh->btso', o, wo) + bo


if __name__ == "__main__":
    key = jax.random.PRNGKey(0)
    B, T, S = 2, 2, 4
    n_heads, n_hidden, n_embd = 4, 32, 16

    keys = jax.random.split(key, 10)
    x = jax.random.normal(keys[0], (B, T, S, n_hidden), jnp.float32)
    adj = jax.random.normal(keys[1], (B, T, S, n_embd), jnp.float32)

    def linear_params(kw, kb, d_in, d_out):
        bound = 1.0 / math.sqrt(d_in)           # torch nn.Linear default init range
        w = jax.random.uniform(kw, (d_out, d_in), jnp.float32, -bound, bound)
        b = jax.random.uniform(kb, (d_out,), jnp.float32, -bound, bound)
        return w, b

    wq, bq = linear_params(keys[2], keys[3], n_hidden, n_hidden)
    wk, bk = linear_params(keys[4], keys[5], n_embd, n_hidden)
    wv, bv = linear_params(keys[6], keys[7], n_embd, n_hidden)
    wo, bo = linear_params(keys[8], keys[9], n_hidden, n_hidden)

    params = (wq.T, bq.reshape(1, -1),
              wk.T, bk.reshape(1, -1),
              wv.T, bv.reshape(1, -1),
              wo.T, bo.reshape(1, -1))

    out = cross_attention(x, adj, params, n_heads)
    out = jax.block_until_ready(out)

    ref = cross_attention_reference(x, adj, wq, bq, wk, bk, wv, bv, wo, bo, n_heads)
    assert out.shape == (B, T, S, n_hidden)
    # Tolerance accounts for bf16 MXU operands + approx reciprocal (f32 accumulation).
    assert jnp.allclose(out, ref, atol=3e-2, rtol=3e-2), "mismatch vs reference"

    print("KERNEL_OK")
</pallas_src>

<mosaic_0001>
module attributes {stable_mosaic.version = 11 : i64} {
  func.func @cross_attention_kernel(%arg0: i32, %arg1: i32, %arg2: memref<1x8x32xbf16, #tpu.memory_space<vmem>>, %arg3: memref<1x8x16xbf16, #tpu.memory_space<vmem>>, %arg4: memref<32x32xbf16, #tpu.memory_space<vmem>>, %arg5: memref<1x32xf32, #tpu.memory_space<vmem>>, %arg6: memref<16x32xbf16, #tpu.memory_space<vmem>>, %arg7: memref<1x32xf32, #tpu.memory_space<vmem>>, %arg8: memref<16x32xbf16, #tpu.memory_space<vmem>>, %arg9: memref<1x32xf32, #tpu.memory_space<vmem>>, %arg10: memref<32x32xbf16, #tpu.memory_space<vmem>>, %arg11: memref<1x32xf32, #tpu.memory_space<vmem>>, %arg12: memref<1x8x32xf32, #tpu.memory_space<vmem>>, %arg13: memref<8x32xbf16, #tpu.memory_space<vmem>>, %arg14: memref<8x32xbf16, #tpu.memory_space<vmem>>) attributes {dimension_semantics = [#tpu.dimension_semantics<parallel>, #tpu.dimension_semantics<arbitrary>], iteration_bounds = array<i64: 2, 1>, scalar_prefetch = 0 : i64, scratch_operands = 2 : i64, tpu.core_type = #tpu.core_type<tc>, window_params = [{transform_indices = @transform_0, window_bounds = array<i64: 1, 8, 32>}, {transform_indices = @transform_1, window_bounds = array<i64: 1, 8, 16>}, {pipeline_mode = #tpu.pipeline_mode<synchronous>, transform_indices = @transform_2, window_bounds = array<i64: 32, 32>}, {pipeline_mode = #tpu.pipeline_mode<synchronous>, transform_indices = @transform_3, window_bounds = array<i64: 1, 32>}, {pipeline_mode = #tpu.pipeline_mode<synchronous>, transform_indices = @transform_4, window_bounds = array<i64: 16, 32>}, {pipeline_mode = #tpu.pipeline_mode<synchronous>, transform_indices = @transform_5, window_bounds = array<i64: 1, 32>}, {pipeline_mode = #tpu.pipeline_mode<synchronous>, transform_indices = @transform_6, window_bounds = array<i64: 16, 32>}, {pipeline_mode = #tpu.pipeline_mode<synchronous>, transform_indices = @transform_7, window_bounds = array<i64: 1, 32>}, {pipeline_mode = #tpu.pipeline_mode<synchronous>, transform_indices = @transform_8, window_bounds = array<i64: 32, 32>}, {pipeline_mode = #tpu.pipeline_mode<synchronous>, transform_indices = @transform_9, window_bounds = array<i64: 1, 32>}, {transform_indices = @transform_10, window_bounds = array<i64: 1, 8, 32>}]} {
    %c0_i32 = arith.constant 0 : i32
    %0 = arith.cmpi eq, %arg1, %c0_i32 : i32
    %1 = arith.extui %0 : i1 to i32
    %c0_i32_0 = arith.constant 0 : i32
    %2 = arith.cmpi ne, %1, %c0_i32_0 : i32
    scf.if %2 {
      %c0_39 = arith.constant 0 : index
      %c0_40 = arith.constant 0 : index
      %c0_41 = arith.constant 0 : index
      %101 = vector.load %arg3[%c0_39, %c0_40, %c0_41] : memref<1x8x16xbf16, #tpu.memory_space<vmem>>, vector<1x8x16xbf16>
      %102 = vector.shape_cast %101 : vector<1x8x16xbf16> to vector<8x16xbf16>
      %c0_42 = arith.constant 0 : index
      %c0_43 = arith.constant 0 : index
      %103 = vector.load %arg6[%c0_42, %c0_43] : memref<16x32xbf16, #tpu.memory_space<vmem>>, vector<16x32xbf16>
      %cst_44 = arith.constant dense<0.000000e+00> : vector<8x32xf32>
      %104 = tpu.matmul %102, %103, %cst_44 {dimension_numbers = #tpu.dot_dimension_numbers<[1], [0], [0], [1], [0, 0, 1, 1], [], []>} : vector<8x16xbf16>, vector<16x32xbf16>, vector<8x32xf32> -> vector<8x32xf32>
      %c0_45 = arith.constant 0 : index
      %c0_46 = arith.constant 0 : index
      %105 = vector.load %arg7[%c0_45, %c0_46] : memref<1x32xf32, #tpu.memory_space<vmem>>, vector<1x32xf32>
      %106 = vector.broadcast %105 : vector<1x32xf32> to vector<8x32xf32>
      %107 = arith.addf %104, %106 : vector<8x32xf32>
      %c0_47 = arith.constant 0 : index
      %c0_48 = arith.constant 0 : index
      %108 = vector.load %arg8[%c0_47, %c0_48] : memref<16x32xbf16, #tpu.memory_space<vmem>>, vector<16x32xbf16>
      %cst_49 = arith.constant dense<0.000000e+00> : vector<8x32xf32>
      %109 = tpu.matmul %102, %108, %cst_49 {dimension_numbers = #tpu.dot_dimension_numbers<[1], [0], [0], [1], [0, 0, 1, 1], [], []>} : vector<8x16xbf16>, vector<16x32xbf16>, vector<8x32xf32> -> vector<8x32xf32>
      %c0_50 = arith.constant 0 : index
      %c0_51 = arith.constant 0 : index
      %110 = vector.load %arg9[%c0_50, %c0_51] : memref<1x32xf32, #tpu.memory_space<vmem>>, vector<1x32xf32>
      %111 = vector.broadcast %110 : vector<1x32xf32> to vector<8x32xf32>
      %112 = arith.addf %109, %111 : vector<8x32xf32>
      %113 = arith.truncf %107 : vector<8x32xf32> to vector<8x32xbf16>
      %c0_52 = arith.constant 0 : index
      %c0_53 = arith.constant 0 : index
      %114 = vector.load %arg13[%c0_52, %c0_53] : memref<8x32xbf16, #tpu.memory_space<vmem>>, vector<8x32xbf16>
      tpu.vector_store %arg13[%c0_52, %c0_53], %113 {strides = array<i32>} : memref<8x32xbf16, #tpu.memory_space<vmem>>, vector<8x32xbf16>,
      %115 = arith.truncf %112 : vector<8x32xf32> to vector<8x32xbf16>
      %c0_54 = arith.constant 0 : index
      %c0_55 = arith.constant 0 : index
      %116 = vector.load %arg14[%c0_54, %c0_55] : memref<8x32xbf16, #tpu.memory_space<vmem>>, vector<8x32xbf16>
      tpu.vector_store %arg14[%c0_54, %c0_55], %115 {strides = array<i32>} : memref<8x32xbf16, #tpu.memory_space<vmem>>, vector<8x32xbf16>,
    } else {
    }
    %c0 = arith.constant 0 : index
    %c0_1 = arith.constant 0 : index
    %c0_2 = arith.constant 0 : index
    %3 = vector.load %arg2[%c0, %c0_1, %c0_2] : memref<1x8x32xbf16, #tpu.memory_space<vmem>>, vector<1x8x32xbf16>
    %4 = vector.shape_cast %3 : vector<1x8x32xbf16> to vector<8x32xbf16>
    %c0_3 = arith.constant 0 : index
    %c0_4 = arith.constant 0 : index
    %5 = vector.load %arg4[%c0_3, %c0_4] : memref<32x32xbf16, #tpu.memory_space<vmem>>, vector<32x32xbf16>
    %cst = arith.constant dense<0.000000e+00> : vector<8x32xf32>
    %6 = tpu.matmul %4, %5, %cst {dimension_numbers = #tpu.dot_dimension_numbers<[1], [0], [0], [1], [0, 0, 1, 1], [], []>} : vector<8x32xbf16>, vector<32x32xbf16>, vector<8x32xf32> -> vector<8x32xf32>
    %c0_5 = arith.constant 0 : index
    %c0_6 = arith.constant 0 : index
    %7 = vector.load %arg5[%c0_5, %c0_6] : memref<1x32xf32, #tpu.memory_space<vmem>>, vector<1x32xf32>
    %8 = vector.broadcast %7 : vector<1x32xf32> to vector<8x32xf32>
    %9 = arith.addf %6, %8 : vector<8x32xf32>
    %10 = arith.truncf %9 : vector<8x32xf32> to vector<8x32xbf16>
    %c0_7 = arith.constant 0 : index
    %c0_8 = arith.constant 0 : index
    %11 = vector.load %arg13[%c0_7, %c0_8] : memref<8x32xbf16, #tpu.memory_space<vmem>>, vector<8x32xbf16>
    %c0_9 = arith.constant 0 : index
    %c0_10 = arith.constant 0 : index
    %12 = vector.load %arg14[%c0_9, %c0_10] : memref<8x32xbf16, #tpu.memory_space<vmem>>, vector<8x32xbf16>
    %c0_11 = arith.constant 0 : index
    %c0_12 = arith.constant 0 : index
    %13 = vector.load %arg10[%c0_11, %c0_12] : memref<32x32xbf16, #tpu.memory_space<vmem>>, vector<32x32xbf16>
    %cst_13 = arith.constant 0.000000e+00 : f32
    %14 = vector.broadcast %cst_13 : f32 to vector<8x32xf32>
    %15 = vector.extract_strided_slice %10 {offsets = [0, 0], sizes = [8, 8], strides = [1, 1]} : vector<8x32xbf16> to vector<8x8xbf16>
    %16 = vector.extract_strided_slice %11 {offsets = [0, 0], sizes = [8, 8], strides = [1, 1]} : vector<8x32xbf16> to vector<8x8xbf16>
    %17 = vector.extract_strided_slice %12 {offsets = [0, 0], sizes = [8, 8], strides = [1, 1]} : vector<8x32xbf16> to vector<8x8xbf16>
    %cst_14 = arith.constant dense<0.000000e+00> : vector<8x8xf32>
    %18 = tpu.matmul %15, %16, %cst_14 {dimension_numbers = #tpu.dot_dimension_numbers<[1], [1], [0], [0], [0, 0, 1, 0], [], []>} : vector<8x8xbf16>, vector<8x8xbf16>, vector<8x8xf32> -> vector<8x8xf32>
    %cst_15 = arith.constant dense<0xFF800000> : vector<8xf32>
    %19 = vector.multi_reduction <maximumf>, %18, %cst_15 [1] : vector<8x8xf32> to vector<8xf32>
    %20 = vector.shape_cast %19 : vector<8xf32> to vector<8x1xf32>
    %21 = vector.broadcast %20 : vector<8x1xf32> to vector<8x8xf32>
    %22 = arith.subf %18, %21 : vector<8x8xf32>
    %23 = math.exp %22 : vector<8x8xf32>
    %cst_16 = arith.constant dense<0.000000e+00> : vector<8xf32>
    %24 = vector.multi_reduction <add>, %23, %cst_16 [1] : vector<8x8xf32> to vector<8xf32>
    %25 = vector.shape_cast %24 : vector<8xf32> to vector<8x1xf32>
    %26 = arith.truncf %23 : vector<8x8xf32> to vector<8x8xbf16>
    %cst_17 = arith.constant dense<0.000000e+00> : vector<8x8xf32>
    %27 = tpu.matmul %26, %17, %cst_17 {dimension_numbers = #tpu.dot_dimension_numbers<[1], [0], [0], [1], [0, 0, 1, 1], [], []>} : vector<8x8xbf16>, vector<8x8xbf16>, vector<8x8xf32> -> vector<8x8xf32>
    %28 = tpu.reciprocal %25 {approx = true} : vector<8x1xf32> -> vector<8x1xf32>
    %29 = vector.broadcast %28 : vector<8x1xf32> to vector<8x8xf32>
    %30 = arith.mulf %27, %29 : vector<8x8xf32>
    %31 = arith.truncf %30 : vector<8x8xf32> to vector<8x8xbf16>
    %32 = vector.extract_strided_slice %13 {offsets = [0, 0], sizes = [8, 32], strides = [1, 1]} : vector<32x32xbf16> to vector<8x32xbf16>
    %cst_18 = arith.constant dense<0.000000e+00> : vector<8x32xf32>
    %33 = tpu.matmul %31, %32, %cst_18 {dimension_numbers = #tpu.dot_dimension_numbers<[1], [0], [0], [1], [0, 0, 1, 1], [], []>} : vector<8x8xbf16>, vector<8x32xbf16>, vector<8x32xf32> -> vector<8x32xf32>
    %34 = arith.addf %14, %33 : vector<8x32xf32>
    %35 = vector.extract_strided_slice %10 {offsets = [0, 8], sizes = [8, 8], strides = [1, 1]} : vector<8x32xbf16> to vector<8x8xbf16>
    %36 = vector.extract_strided_slice %11 {offsets = [0, 8], sizes = [8, 8], strides = [1, 1]} : vector<8x32xbf16> to vector<8x8xbf16>
    %37 = vector.extract_strided_slice %12 {offsets = [0, 8], sizes = [8, 8], strides = [1, 1]} : vector<8x32xbf16> to vector<8x8xbf16>
    %cst_19 = arith.constant dense<0.000000e+00> : vector<8x8xf32>
    %38 = tpu.matmul %35, %36, %cst_19 {dimension_numbers = #tpu.dot_dimension_numbers<[1], [1], [0], [0], [0, 0, 1, 0], [], []>} : vector<8x8xbf16>, vector<8x8xbf16>, vector<8x8xf32> -> vector<8x8xf32>
    %cst_20 = arith.constant dense<0xFF800000> : vector<8xf32>
    %39 = vector.multi_reduction <maximumf>, %38, %cst_20 [1] : vector<8x8xf32> to vector<8xf32>
    %40 = vector.shape_cast %39 : vector<8xf32> to vector<8x1xf32>
    %41 = vector.broadcast %40 : vector<8x1xf32> to vector<8x8xf32>
    %42 = arith.subf %38, %41 : vector<8x8xf32>
    %43 = math.exp %42 : vector<8x8xf32>
    %cst_21 = arith.constant dense<0.000000e+00> : vector<8xf32>
    %44 = vector.multi_reduction <add>, %43, %cst_21 [1] : vector<8x8xf32> to vector<8xf32>
    %45 = vector.shape_cast %44 : vector<8xf32> to vector<8x1xf32>
    %46 = arith.truncf %43 : vector<8x8xf32> to vector<8x8xbf16>
    %cst_22 = arith.constant dense<0.000000e+00> : vector<8x8xf32>
    %47 = tpu.matmul %46, %37, %cst_22 {dimension_numbers = #tpu.dot_dimension_numbers<[1], [0], [0], [1], [0, 0, 1, 1], [], []>} : vector<8x8xbf16>, vector<8x8xbf16>, vector<8x8xf32> -> vector<8x8xf32>
    %48 = tpu.reciprocal %45 {approx = true} : vector<8x1xf32> -> vector<8x1xf32>
    %49 = vector.broadcast %48 : vector<8x1xf32> to vector<8x8xf32>
    %50 = arith.mulf %47, %49 : vector<8x8xf32>
    %51 = arith.truncf %50 : vector<8x8xf32> to vector<8x8xbf16>
    %52 = vector.extract_strided_slice %13 {offsets = [8, 0], sizes = [8, 32], strides = [1, 1]} : vector<32x32xbf16> to vector<8x32xbf16>
    %cst_23 = arith.constant dense<0.000000e+00> : vector<8x32xf32>
    %53 = tpu.matmul %51, %52, %cst_23 {dimension_numbers = #tpu.dot_dimension_numbers<[1], [0], [0], [1], [0, 0, 1, 1], [], []>} : vector<8x8xbf16>, vector<8x32xbf16>, vector<8x32xf32> -> vector<8x32xf32>
    %54 = arith.addf %34, %53 : vector<8x32xf32>
    %55 = vector.extract_strided_slice %10 {offsets = [0, 16], sizes = [8, 8], strides = [1, 1]} : vector<8x32xbf16> to vector<8x8xbf16>
    %56 = vector.extract_strided_slice %11 {offsets = [0, 16], sizes = [8, 8], strides = [1, 1]} : vector<8x32xbf16> to vector<8x8xbf16>
    %57 = vector.extract_strided_slice %12 {offsets = [0, 16], sizes = [8, 8], strides = [1, 1]} : vector<8x32xbf16> to vector<8x8xbf16>
    %cst_24 = arith.constant dense<0.000000e+00> : vector<8x8xf32>
    %58 = tpu.matmul %55, %56, %cst_24 {dimension_numbers = #tpu.dot_dimension_numbers<[1], [1], [0], [0], [0, 0, 1, 0], [], []>} : vector<8x8xbf16>, vector<8x8xbf16>, vector<8x8xf32> -> vector<8x8xf32>
    %cst_25 = arith.constant dense<0xFF800000> : vector<8xf32>
    %59 = vector.multi_reduction <maximumf>, %58, %cst_25 [1] : vector<8x8xf32> to vector<8xf32>
    %60 = vector.shape_cast %59 : vector<8xf32> to vector<8x1xf32>
    %61 = vector.broadcast %60 : vector<8x1xf32> to vector<8x8xf32>
    %62 = arith.subf %58, %61 : vector<8x8xf32>
    %63 = math.exp %62 : vector<8x8xf32>
    %cst_26 = arith.constant dense<0.000000e+00> : vector<8xf32>
    %64 = vector.multi_reduction <add>, %63, %cst_26 [1] : vector<8x8xf32> to vector<8xf32>
    %65 = vector.shape_cast %64 : vector<8xf32> to vector<8x1xf32>
    %66 = arith.truncf %63 : vector<8x8xf32> to vector<8x8xbf16>
    %cst_27 = arith.constant dense<0.000000e+00> : vector<8x8xf32>
    %67 = tpu.matmul %66, %57, %cst_27 {dimension_numbers = #tpu.dot_dimension_numbers<[1], [0], [0], [1], [0, 0, 1, 1], [], []>} : vector<8x8xbf16>, vector<8x8xbf16>, vector<8x8xf32> -> vector<8x8xf32>
    %68 = tpu.reciprocal %65 {approx = true} : vector<8x1xf32> -> vector<8x1xf32>
    %69 = vector.broadcast %68 : vector<8x1xf32> to vector<8x8xf32>
    %70 = arith.mulf %67, %69 : vector<8x8xf32>
    %71 = arith.truncf %70 : vector<8x8xf32> to vector<8x8xbf16>
    %72 = vector.extract_strided_slice %13 {offsets = [16, 0], sizes = [8, 32], strides = [1, 1]} : vector<32x32xbf16> to vector<8x32xbf16>
    %cst_28 = arith.constant dense<0.000000e+00> : vector<8x32xf32>
    %73 = tpu.matmul %71, %72, %cst_28 {dimension_numbers = #tpu.dot_dimension_numbers<[1], [0], [0], [1], [0, 0, 1, 1], [], []>} : vector<8x8xbf16>, vector<8x32xbf16>, vector<8x32xf32> -> vector<8x32xf32>
    %74 = arith.addf %54, %73 : vector<8x32xf32>
    %75 = vector.extract_strided_slice %10 {offsets = [0, 24], sizes = [8, 8], strides = [1, 1]} : vector<8x32xbf16> to vector<8x8xbf16>
    %76 = vector.extract_strided_slice %11 {offsets = [0, 24], sizes = [8, 8], strides = [1, 1]} : vector<8x32xbf16> to vector<8x8xbf16>
    %77 = vector.extract_strided_slice %12 {offsets = [0, 24], sizes = [8, 8], strides = [1, 1]} : vector<8x32xbf16> to vector<8x8xbf16>
    %cst_29 = arith.constant dense<0.000000e+00> : vector<8x8xf32>
    %78 = tpu.matmul %75, %76, %cst_29 {dimension_numbers = #tpu.dot_dimension_numbers<[1], [1], [0], [0], [0, 0, 1, 0], [], []>} : vector<8x8xbf16>, vector<8x8xbf16>, vector<8x8xf32> -> vector<8x8xf32>
    %cst_30 = arith.constant dense<0xFF800000> : vector<8xf32>
    %79 = vector.multi_reduction <maximumf>, %78, %cst_30 [1] : vector<8x8xf32> to vector<8xf32>
    %80 = vector.shape_cast %79 : vector<8xf32> to vector<8x1xf32>
    %81 = vector.broadcast %80 : vector<8x1xf32> to vector<8x8xf32>
    %82 = arith.subf %78, %81 : vector<8x8xf32>
    %83 = math.exp %82 : vector<8x8xf32>
    %cst_31 = arith.constant dense<0.000000e+00> : vector<8xf32>
    %84 = vector.multi_reduction <add>, %83, %cst_31 [1] : vector<8x8xf32> to vector<8xf32>
    %85 = vector.shape_cast %84 : vector<8xf32> to vector<8x1xf32>
    %86 = arith.truncf %83 : vector<8x8xf32> to vector<8x8xbf16>
    %cst_32 = arith.constant dense<0.000000e+00> : vector<8x8xf32>
    %87 = tpu.matmul %86, %77, %cst_32 {dimension_numbers = #tpu.dot_dimension_numbers<[1], [0], [0], [1], [0, 0, 1, 1], [], []>} : vector<8x8xbf16>, vector<8x8xbf16>, vector<8x8xf32> -> vector<8x8xf32>
    %88 = tpu.reciprocal %85 {approx = true} : vector<8x1xf32> -> vector<8x1xf32>
    %89 = vector.broadcast %88 : vector<8x1xf32> to vector<8x8xf32>
    %90 = arith.mulf %87, %89 : vector<8x8xf32>
    %91 = arith.truncf %90 : vector<8x8xf32> to vector<8x8xbf16>
    %92 = vector.extract_strided_slice %13 {offsets = [24, 0], sizes = [8, 32], strides = [1, 1]} : vector<32x32xbf16> to vector<8x32xbf16>
    %cst_33 = arith.constant dense<0.000000e+00> : vector<8x32xf32>
    %93 = tpu.matmul %91, %92, %cst_33 {dimension_numbers = #tpu.dot_dimension_numbers<[1], [0], [0], [1], [0, 0, 1, 1], [], []>} : vector<8x8xbf16>, vector<8x32xbf16>, vector<8x32xf32> -> vector<8x32xf32>
    %94 = arith.addf %74, %93 : vector<8x32xf32>
    %c0_34 = arith.constant 0 : index
    %c0_35 = arith.constant 0 : index
    %95 = vector.load %arg11[%c0_34, %c0_35] : memref<1x32xf32, #tpu.memory_space<vmem>>, vector<1x32xf32>
    %96 = vector.broadcast %95 : vector<1x32xf32> to vector<8x32xf32>
    %97 = arith.addf %94, %96 : vector<8x32xf32>
    %c0_36 = arith.constant 0 : index
    %c0_37 = arith.constant 0 : index
    %c0_38 = arith.constant 0 : index
    %98 = vector.load %arg12[%c0_36, %c0_37, %c0_38] : memref<1x8x32xf32, #tpu.memory_space<vmem>>, vector<1x8x32xf32>
    %99 = vector.shape_cast %98 : vector<1x8x32xf32> to vector<8x32xf32>
    %100 = vector.shape_cast %97 : vector<8x32xf32> to vector<1x8x32xf32>
    tpu.vector_store %arg12[%c0_36, %c0_37, %c0_38], %100 {strides = array<i32>} : memref<1x8x32xf32, #tpu.memory_space<vmem>>, vector<1x8x32xf32>,
    return
  }
  func.func @transform_0(%arg0: i32, %arg1: i32) -> (i32, i32, i32) {
    %c0_i32 = arith.constant 0 : i32
    %c0_i32_0 = arith.constant 0 : i32
    return %arg0, %arg1, %c0_i32 : i32, i32, i32
  }
  func.func @transform_1(%arg0: i32, %arg1: i32) -> (i32, i32, i32) {
    %c0_i32 = arith.constant 0 : i32
    %c0_i32_0 = arith.constant 0 : i32
    %c0_i32_1 = arith.constant 0 : i32
    return %arg0, %c0_i32, %c0_i32_0 : i32, i32, i32
  }
  func.func @transform_2(%arg0: i32, %arg1: i32) -> (i32, i32) {
    %c0_i32 = arith.constant 0 : i32
    %c0_i32_0 = arith.constant 0 : i32
    %c0_i32_1 = arith.constant 0 : i32
    return %c0_i32, %c0_i32_0 : i32, i32
  }
  func.func @transform_3(%arg0: i32, %arg1: i32) -> (i32, i32) {
    %c0_i32 = arith.constant 0 : i32
    %c0_i32_0 = arith.constant 0 : i32
    %c0_i32_1 = arith.constant 0 : i32
    return %c0_i32, %c0_i32_0 : i32, i32
  }
  func.func @transform_4(%arg0: i32, %arg1: i32) -> (i32, i32) {
    %c0_i32 = arith.constant 0 : i32
    %c0_i32_0 = arith.constant 0 : i32
    %c0_i32_1 = arith.constant 0 : i32
    return %c0_i32, %c0_i32_0 : i32, i32
  }
  func.func @transform_5(%arg0: i32, %arg1: i32) -> (i32, i32) {
    %c0_i32 = arith.constant 0 : i32
    %c0_i32_0 = arith.constant 0 : i32
    %c0_i32_1 = arith.constant 0 : i32
    return %c0_i32, %c0_i32_0 : i32, i32
  }
  func.func @transform_6(%arg0: i32, %arg1: i32) -> (i32, i32) {
    %c0_i32 = arith.constant 0 : i32
    %c0_i32_0 = arith.constant 0 : i32
    %c0_i32_1 = arith.constant 0 : i32
    return %c0_i32, %c0_i32_0 : i32, i32
  }
  func.func @transform_7(%arg0: i32, %arg1: i32) -> (i32, i32) {
    %c0_i32 = arith.constant 0 : i32
    %c0_i32_0 = arith.constant 0 : i32
    %c0_i32_1 = arith.constant 0 : i32
    return %c0_i32, %c0_i32_0 : i32, i32
  }
  func.func @transform_8(%arg0: i32, %arg1: i32) -> (i32, i32) {
    %c0_i32 = arith.constant 0 : i32
    %c0_i32_0 = arith.constant 0 : i32
    %c0_i32_1 = arith.constant 0 : i32
    return %c0_i32, %c0_i32_0 : i32, i32
  }
  func.func @transform_9(%arg0: i32, %arg1: i32) -> (i32, i32) {
    %c0_i32 = arith.constant 0 : i32
    %c0_i32_0 = arith.constant 0 : i32
    %c0_i32_1 = arith.constant 0 : i32
    return %c0_i32, %c0_i32_0 : i32, i32
  }
  func.func @transform_10(%arg0: i32, %arg1: i32) -> (i32, i32, i32) {
    %c0_i32 = arith.constant 0 : i32
    %c0_i32_0 = arith.constant 0 : i32
    return %arg0, %arg1, %c0_i32 : i32, i32, i32
  }
}

</mosaic_0001>

<bundles_post_ra>
// kernel: tpu_custom_call.1
= control target key start
LH: loop header
LB: loop body
LE: loop exit
PB: predicated region body
PF: predicated region fallthrough
CT: control target
= control target key end

     0   :  { %s1864_s0 = inlined_call_operand.hbm [shape: bf16[2,8,32], index: 0, kind: input, shape index: {}]   ;;  %s1865_s1 = inlined_call_operand.hbm [shape: bf16[2,8,16], index: 1, kind: input, shape index: {}]   ;;  %s1866_s2 = inlined_call_operand.hbm [shape: bf16[32,32], index: 2, kind: input, shape index: {}]   ;;  %s1867_s3 = inlined_call_operand.vmem [shape: f32[1,32], index: 3, kind: input, shape index: {}]   ;;  %s1868_s4 = inlined_call_operand.hbm [shape: bf16[16,32], index: 4, kind: input, shape index: {}]   ;;  %s1869_s5 = inlined_call_operand.vmem [shape: f32[1,32], index: 5, kind: input, shape index: {}]   ;;  %s1870_s6 = inlined_call_operand.hbm [shape: bf16[16,32], index: 6, kind: input, shape index: {}]   ;;  %s1871_s7 = inlined_call_operand.vmem [shape: f32[1,32], index: 7, kind: input, shape index: {}]   ;;  %s1872_s8 = inlined_call_operand.hbm [shape: bf16[32,32], index: 8, kind: input, shape index: {}]   ;;  %s1873_s9 = inlined_call_operand.vmem [shape: f32[1,32], index: 9, kind: input, shape index: {}]   ;;  %s1874_s10 = inlined_call_operand.hbm [shape: f32[2,8,32], index: 10, kind: output, shape index: {}]  }
   0x1   :  { %1882 = sst [smem:[#allocation29_spill]] %s1866_s2 }
   0x2   :  { %1883 = sst [smem:[#allocation30_spill]] %s1868_s4 }
   0x3   :  { %1884 = sst [smem:[#allocation31_spill]] %s1870_s6 }
   0x4   :  { %1885 = sst [smem:[#allocation32_spill]] %s1872_s8 }
   0x5   :  { %15 = vsyncpa [#allocation5], 0 }
   0x6   :  { %17 = vsyncpa [#allocation5 + $0x1], 0 }
   0x7   :  { %18 = vsyncpa [#allocation8], 0 }
   0x8   :  { %20 = vsyncpa [#allocation8 + $0x1], 0 }
   0x9   :  { %21 = vsyncpa [#allocation11], 0 }
   0xa   :  { %22 = vsyncpa [#allocation14], 0 }
   0xb   :  { %23 = vsyncpa [#allocation6], 0 }
   0xc   :  { %25 = vsyncpa [#allocation6 + $0x1], 0  ;;  %s1620_s13 = smov 0   ;;  %s1622_s14 = smov 0  }
   0xd   :  { %s1624_s15 = smov 0   ;;  %s1626_s16 = smov 0  }
   0xe   :  { %s1628_s17 = smov 0   ;;  %s1630_s18 = smov 0  }
   0xf LB: > { %1886 = sst [smem:[#allocation22_spill]] %s1534_s13  ;;  %s1651_s19 = sadd.s32 4294967295, %s1554_s18   ;;  %s1554_s18 = sphi %s1630_s18, %s31_s18   ;;  %s1550_s17 = sphi %s1628_s17, %s1909_s17   ;;  %s1546_s16 = sphi %s1626_s16, %s1908_s16   ;;  %s1542_s15 = sphi %s1624_s15, %s1907_s15   ;;  %s1538_s14 = sphi %s1622_s14, %s1911_s14   ;;  %s1534_s13 = sphi %s1620_s13, %s1910_s13  }
  0x10   : > { %1887 = sst [smem:[#allocation23_spill]] %s1542_s15  ;;  %p1086_p0 = scmp.ge.s32.totalorder %s1554_s18, 1 }
  0x11   : > { %1888 = sst [smem:[#allocation24_spill]] %s1550_s17  ;;  %p66_p1 = scmp.eq.s32.totalorder %s1651_s19, 0 }
  0x12   : > { %p298_p2 = scmp.lt.s32.totalorder %s1554_s18, 3  ;;  %s1889_s2 = sld [smem:[#allocation29_spill]] }
  0x13   : > { %s1556_s24 = smov [#allocation9]   ;;  %p1091_p6 = scmp.ge.s32.totalorder %s1554_s18, 2 }
  0x14   : > { %p1659_p3 = pnand %p1086_p0, %p298_p2  ;;  %s311_s25 = sshll.u32 %s1556_s24, 4  ;;  %s312_s25 = int_to_ptr.vmem [resolvable:$true] %s311_s25 }
  0x15   : > { %s1892_s4 = sld [smem:[#allocation30_spill]]  ;;  %s1557_s30 = smov 64  }
  0x16   : > { %p1165_p4 = pneg %p1659_p3  ;;  %s1558_s11 = smov 4  }
  0x17   : > { %s1559_s12 = smov [#allocation10]   ;;  %s1893_s6 = sld [smem:[#allocation31_spill]] }
  0x18   : > { %s309_s22 = sshll.u32 %s1889_s2, 4  ;;  %p1667_p5 = pnand %p1165_p4, %p66_p1  ;;  %s310_s22 = int_to_ptr.hbm [resolvable:$true] %s309_s22 }
  0x19   : > { %s328_s20 = sshll.u32 %s1559_s12, 4  ;;  %s1894_s8 = sld [smem:[#allocation32_spill]]  ;;  %s329_s20 = int_to_ptr.vmem [resolvable:$true] %s328_s20 }
  0x1a   : > { %1168 = dma.hbm_to_vmem [thread:$0]  (!%p1667_p5), %s310_s22, 256, %s312_s25, [#allocation8], %s1557_s30, %s1557_s30, %s1558_s11  }
  0x1b   : > { %s326_s29 = sshll.u32 %s1892_s4, 4  ;;  %s1560_s25 = smov [#allocation12]   ;;  %s327_s29 = int_to_ptr.hbm [resolvable:$true] %s326_s29 }
  0x1c   : > { %1171 = dma.hbm_to_vmem [thread:$0]  (!%p1667_p5), %s327_s29, 128, %s329_s20, [#allocation11], %s1557_s30, %s1557_s30, %s1558_s11  }
  0x1d   : > { %s343_s2 = sshll.u32 %s1893_s6, 4  ;;  %s345_s4 = sshll.u32 %s1560_s25, 4  ;;  %s344_s2 = int_to_ptr.hbm [resolvable:$true] %s343_s2  ;;  %s346_s4 = int_to_ptr.vmem [resolvable:$true] %s345_s4 }
  0x1e   : > { %1174 = dma.hbm_to_vmem [thread:$0]  (!%p1667_p5), %s344_s2, 128, %s346_s4, [#allocation11], %s1557_s30, %s1557_s30, %s1558_s11  }
  0x1f   : > { %s360_s22 = sshll.u32 %s1894_s8, 4  ;;  %s1561_s12 = smov [#allocation13]   ;;  %s361_s22 = int_to_ptr.hbm [resolvable:$true] %s360_s22 }
  0x20   : > { %s362_s21 = sshll.u32 %s1561_s12, 4  ;;  %s1085_s29 = sadd.s32 4294967294, %s1554_s18   ;;  %s363_s21 = int_to_ptr.vmem [resolvable:$true] %s362_s21 }
  0x21   : > { %1177 = dma.hbm_to_vmem [thread:$0]  (!%p1667_p5), %s361_s22, 256, %s363_s21, [#allocation14], %s1557_s30, %s1557_s30, %s1558_s11  }
  0x22   : > { %s43_s20 = sadd.s32 1, %s1550_s17  ;;  %s52_s24 = sadd.s32 1, %s1542_s15 }
  0x23   : > { %p45_p7 = scmp.ge.s32.totalorder %s43_s20, 2  ;;  %p59_p8 = scmp.ne.s32.totalorder %s1542_s15, %s1538_s14 }
  0x24   : > { %p60_p9 = scmp.eq.s32.totalorder %s1554_s18, 0  ;;  %p65_p11 = scmp.ne.s32.totalorder %s1538_s14, %s1534_s13 }
  0x25   : > { %s1913_s20 = smov (%p45_p7, %s43_s20), 0  ;;  %p285_p12 = scmp.eq.s32.totalorder %s1651_s19, 1 }
  0x26   : > { %1895 = sst [smem:[#allocation25_spill]] %s1913_s20  ;;  %p1697_p10 = por %p60_p9, %p59_p8 }
  0x27   : > { %s47_s4 = ssub.s32 %s1550_s17, %s1913_s20  ;;  %p1708_p0 = por %p66_p1, %p65_p11 }
  0x28   : > { %p50_p13 = scmp.eq.s32.totalorder %s47_s4, 0  ;;  %p1712_p2 = por %p285_p12, %p59_p8 }
  0x29   : > { %p291_p4 = scmp.eq.s32.totalorder %s1085_s29, 1  ;;  %p1193_p7 = scmp.lt.s32.totalorder %s1554_s18, 2 }
  0x2a   : > { %s1898_s30 = scalar_select %p1712_p2, 1, 0 }
  0x2b   : > { %s1717_s11 = scalar_select %p50_p13, %s1542_s15, %s52_s24  }
  0x2c   : > { %1899 = sst [smem:[#allocation26_spill]] %s1898_s30  ;;  %p1719_p5 = por %p291_p4, %p65_p11 }
  0x2d   : > { %1900 = sst [smem:[#allocation27_spill]] %s1717_s11  ;;  %s379_s28 = sand.u32 1, %s1542_s15  }
  0x2e   : > { %s1901_s27 = scalar_select %p1719_p5, 1, 0 }
  0x2f   : > { %s1093_s22 = sshll.u32 %s1550_s17, 2  ;;  %s1092_s25 = sshll.u32 %s379_s28, 2 }
  0x30   : > { %1902 = sst [smem:[#allocation28_spill]] %s1901_s27  ;;  %s388_s4 = scalar_lea.hbm %s1864_s0, %s1093_s22 }
  0x31   : > { %s390_s6 = sshll.u32 %s388_s4, 4  ;;  %s383_s8 = scalar_lea.vmem [#allocation4], %s1092_s25  ;;  %s391_s6 = int_to_ptr.hbm [resolvable:$true] %s390_s6 }
  0x32   : > { %s392_s20 = sshll.u32 %s383_s8, 4  ;;  %p1179_p8 = pnand %p1193_p7, %p1697_p10  ;;  %s393_s20 = int_to_ptr.vmem [resolvable:$true] %s392_s20 }
  0x33   : > { %s407_s11 = scalar_lea.hbm %s1865_s1, %s1093_s22  ;;  %s399_s27 = sand.u32 1, %s1554_s18  }
  0x34   : > { %s380_s13 = scalar_lea.sflag [#allocation5], %s379_s28  ;;  %s409_s17 = sshll.u32 %s407_s11, 4  ;;  %s410_s17 = int_to_ptr.hbm [resolvable:$true] %s409_s17 }
  0x35   : > { %1181 = dma.hbm_to_vmem [thread:$0]  (!%p1179_p8), %s391_s6, 64, %s393_s20, %s380_s13  }
  0x36   : > { %s403_s15 = scalar_lea.vmem [#allocation7], %s1092_s25  ;;  %s400_s12 = scalar_lea.sflag [#allocation8], %s399_s27 }
  0x37   : > { %s411_s30 = sshll.u32 %s403_s15, 4  ;;  %420 = sbr.rel (%p1659_p3) target bundleno = 1178 (0x49a), region = 60  ;;  %s412_s30 = int_to_ptr.vmem [resolvable:$true] %s411_s30 }
  0x38   : > { %1184 = dma.hbm_to_vmem [thread:$0]  (!%p1179_p8), %s410_s17, 64, %s412_s30, %s400_s12  }
  0x39   : > { %s1738_s8 = sand.u32 (!%p1659_p3), 1, %s1538_s14  }
  0x3a   : > { %s1097_s2 = sshll.u32 (!%p1659_p3), %s1738_s8, 2  ;;  %s423_s22 = scalar_lea.sflag (!%p1659_p3), [#allocation5], %s1738_s8 }
  0x3b   : > { %s426_s28 = scalar_lea.vmem (!%p1659_p3), [#allocation4], %s1097_s2 }
  0x3c   : > { %1509 = dma.done.wait (%p1708_p0), %s423_s22, 64  }
  0x3d   : > { %1511 = vsyncadd (%p1708_p0), %s423_s22, 4294967232  ;;  %s432_s6 = sand.u32 1, %s1651_s19   ;;  %s436_s15 = scalar_lea.vmem [#allocation7], %s1097_s2 }
  0x3e   : > { %s433_s13 = scalar_lea.sflag [#allocation8], %s432_s6 }
  0x3f   : > { %1513 = dma.done.wait (%p1708_p0), %s433_s13, 64  }
  0x40   : > { %1515 = vsyncadd (%p1708_p0), %s433_s13, 4294967232 }
  0x41   : > { %1517 = dma.done.wait (%p66_p1), [#allocation8], 256  }
  0x42   : > { %1519 = vsyncadd (%p66_p1), [#allocation8], 4294967040 }
  0x43   : > { %1521 = dma.done.wait (%p66_p1), [#allocation11], 256  }
  0x44   : > { %1523 = vsyncadd (%p66_p1), [#allocation11], 4294967040 }
  0x45   : > { %1525 = dma.done.wait (%p66_p1), [#allocation14], 256  }
  0x46   : > { %1527 = vsyncadd (%p66_p1), [#allocation14], 4294967040  ;;  %v1139_v0 = vld [vmem:[#allocation10] sm:$0xff]  ;;  %v1142_v1 = vld [vmem:[#allocation9 + $0x8] sm:$0xff]  ;;  %vm517_vm0 = vcmask 130048   ;;  %vm585_vm1 = vcmask 261120  }
  0x47   : > { %v504_v2 = vld [vmem:[%s436_s15] sm:$0xf]  ;;  %528 = vmatpush.bf16.msra.mxu0 %v1139_v0  ;;  %595 = vmatpush.bf16.msra.mxu2 %v1142_v1  ;;  %v1141_v3 = vld [vmem:[#allocation9] sm:$0xff]  ;;  %v564_v4 = vld [vmem:[%s426_s28] sm:$0xf]  ;;  %vm560_vm2 = vcmask 257024  }
  0x48   : > { %v1256_v5 = vld [vmem:[%s1869_s5] ss:$0 sm:$0xff]  ;;  %vm609_vm3 = vcmask 64512   ;;  %s1562_s26 = smov 112   ;;  %s1563_s30 = smov 104   ;;  %v1140_v21 = vld [vmem:[#allocation12] sm:$0xff] }
  0x49   : > { %v1257_v10 = vld [vmem:[%s1867_s3] ss:$0 sm:$0xff]  ;;  %553 = vmatpush.bf16.msra.mxu1 %v1140_v21  ;;  %s1564_s11 = smov 120   ;;  %vm642_vm4 = vcmask 1043456   ;;  %v605_v31 = vld [vmem:[#allocation13] sm:$0xf] }
  0x4a   : > { %1108 = vmatmul.msk.bf16.vlgmr.msra.gmra.mxu0 %vm517_vm0, %v504_v2  ;;  %v1258_v25 = vld [vmem:[%s1871_s7] ss:$0 sm:$0xff]  ;;  %v751_v34 = vsel %vm642_vm4, %v605_v31, 0  ;;  %s1103_s21 = sshll.u32 %s1738_s8, 3  ;;  %s1136_s4 = sshll.u32 %s1546_s16, 3 }
  0x4b   : > { %596 = vmatpush.bf16.msra.mxu2 %v1141_v3  ;;  %s938_s12 = scalar_lea.hbm %s1874_s10, %s1136_s4  ;;  %s498_s6 = scalar_lea.vmem [#allocation15], %s1103_s21 }
  0x4c   : > { %1113 = vmatmul.msk.bf16.vlgmr.msra.gmra.mxu1 %vm517_vm0, %v504_v2  ;;  %s940_s13 = sshll.u32 %s498_s6, 4  ;;  %s942_s15 = sshll.u32 %s938_s12, 4  ;;  %s941_s13 = int_to_ptr.vmem [resolvable:$true] %s940_s13  ;;  %s943_s15 = int_to_ptr.hbm [resolvable:$true] %s942_s15 }
  0x4d   : > { %s927_s16 = scalar_lea.sflag [#allocation6], %s1738_s8  ;;  %s1470_s17 = sshra.s32 %s943_s15, 4  ;;  %s1471_s17 = int_to_ptr.hbm [resolvable:$true] %s1470_s17 }
  0x4e   : > { %1122 = vmatmul.msk.bf16.vlgmr.msra.gmra.mxu2 %vm585_vm1, %v564_v4  ;;  %s1472_s23 = scalar_lea.hbm %s1471_s17, 8  ;;  %p1477_p10 = scmp.lt.s32.totalorder %s1471_s17, %s1874_s10 }
  0x4f   : > { %p1473_p1 = scmp.ne.s32.totalorder %s1471_s17, %s1472_s23 }
  0x51   : > { %p1474_p3 = pnand %p1473_p1, %p1712_p2 }
  0x53   : > { %p1475_p9 = pneg %p1474_p3 }
  0xc7   : > { %v530_v6 = vpop.f32.mrf.mxu0 }
  0xc8   : > { %v531_v7 = vadd.f32 %v1256_v5, %v530_v6 }
  0xc9   : > { %v555_v26 = vpop.f32.mrf.mxu1 }
  0xca   : > { %v559_v8 = vpack.c.bf16 %v531_v7, %v531_v7  ;;  %v556_v27 = vadd.f32 %v1258_v25, %v555_v26 }
  0xcc   : > { %561 = vst.msk [vmem:[#allocation2] sm:$0xf] %vm560_vm2, %v559_v8  ;;  %v562_v28 = vpack.c.bf16 %v556_v27, %v556_v27 }
  0xce   : > { %563 = vst.msk [vmem:[#allocation3] sm:$0xf] %vm560_vm2, %v562_v28  ;;  %v606_v28 = vld [vmem:[#allocation13 + $0x4] sm:$0xf] }
  0xcf   : > { %v532_v9 = vpop.f32.mrf.mxu0 }
  0xd1   : > { %v598_v11 = vpop.f32.mrf.mxu2  ;;  %v557_v29 = vpop.f32.mrf.mxu1 }
  0xd2   : > { %v599_v13 = vadd.f32 %v1257_v10, %v598_v11  ;;  %v732_v29 = vsel %vm642_vm4, %v606_v28, 0 }
  0xd3   : > { %v603_v12 = vld [vmem:[#allocation2] sm:$0xf] }
  0xd4   : > { %v614_v14 = vsel %vm609_vm3, %v603_v12, 0  ;;  %v668_v15 = vunpack.c.l.b16 %v603_v12  ;;  %v602_v17 = vpack.c.bf16 %v599_v13, %v599_v13 }
  0xd5   : > { %623 = vmatpush.bf16.xpose.msra.mxu3 %v614_v14  ;;  %v604_v30 = vld [vmem:[#allocation3] sm:$0xf] }
  0xd6   : > { %v669_v16 = vpack.c.b16 %v668_v15, %v668_v15  ;;  %v663_v19 = vunpack.c.l.b16 %v602_v17  ;;  %v644_v32 = vsel %vm642_vm4, %v604_v30, 0  ;;  %v702_v33 = vunpack.c.l.b16 %v604_v30  ;;  %v607_v30 = vld [vmem:[#allocation13 + $0x8] sm:$0xf] }
  0xd7   : > { %653 = vmatpush.bf16.msrb.mxu0 %v644_v32  ;;  %v827_v31 = vsel %vm642_vm4, %v607_v30, 0 }
  0xd8   : > { %768 = vrot.lane.b32.xlu2 %v669_v16, %s1562_s26  ;;  %v664_v20 = vpack.c.b16 %v663_v19, %v663_v19  ;;  %v703_v35 = vpack.c.b16 %v702_v33, %v702_v33  ;;  %v608_v33 = vld [vmem:[#allocation13 + $0xc] sm:$0xf] }
  0xd9   : > { %v600_v18 = vpop.f32.mrf.mxu2 }
  0xdb   : > { %760 = vmatpush.bf16.msra.mxu0 %v751_v34  ;;  %v904_v34 = vsel %vm642_vm4, %v608_v33, 0 }
  0xdc   : > { %1123 = vmatmul.msk.bf16.vlgmr.msra.gmra.mxu3 %vm609_vm3, %v602_v17 }
  0xdd   : > { %741 = vmatpush.bf16.msrb.mxu3 %v732_v29 }
  0xe0   : > { %845 = vrot.lane.b32.xlu2 %v669_v16, %s1563_s30 }
  0xe1   : > { %836 = vmatpush.bf16.msra.mxu3 %v827_v31 }
  0xe8   : > { %766 = vrot.lane.b32.xlu2 %v664_v20, %s1562_s26 }
  0xf0   : > { %843 = vrot.lane.b32.xlu2 %v664_v20, %s1563_s30 }
  0xf8   : > { %704 = vrot.lane.b32.xlu2 %v703_v35, %s1564_s11 }
 0x132   : > { %v769_v37 = vpop.permute.xlu2 %768 }
 0x133   : > { %v774_v47 = vsel %vm609_vm3, %v769_v37, 0 }
 0x13a   : > { %v846_v41 = vpop.permute.xlu2 %845 }
 0x13b   : > { %v851_v44 = vsel %vm609_vm3, %v846_v41, 0 }
 0x142   : > { %v767_v48 = vpop.permute.xlu2 %766 }
 0x14a   : > { %v844_v49 = vpop.permute.xlu2 %843 }
 0x152   : > { %v705_v50 = vpop.permute.xlu2 %704 }
 0x153   : > { %v710_v51 = vsel %vm642_vm4, %v705_v50, 0 }
 0x154   : > { %719 = vmatpush.bf16.msrb.mxu2 %v710_v51 }
 0x15f   : > { %v625_v22 = vpop.f32.mrf.mxu3 }
 0x160   : > { %v629_v23 = vsel %vm609_vm3, %v625_v22, -inf }
 0x161   : > { %630 = vmax.xlane.f32.xlu0 %v629_v23 }
 0x167   : > { %v627_v24 = vpop.f32.mrf.mxu3 }
 0x175   : > { %670 = vrot.lane.b32.xlu0 %v669_v16, %s1564_s11 }
 0x1d4   : > { %v631_v36 = vpop.xlane.xlu0 %630 }
 0x1d5   : > { %v632_v38 = vsub.f32 %v625_v22, %v631_v36 }
 0x1d7   : > { %v633_v39 = vmul.f32 1.442695, %v632_v38 }
 0x1d9   : > { %1260 = vpow2.f32 %v633_v39 }
 0x1df   : > { %v1261_v40 = vpop.eup %1260 }
 0x1e0   : > { %v635_v42 = vsel %vm609_vm3, %v1261_v40, 0.0  ;;  %v638_v43 = vpack.c.bf16 %v1261_v40, %v1261_v40 }
 0x1e1   : > { %636 = vadd.xlane.f32.xlu1 %v635_v42 }
 0x1e2   : > { %1124 = vmatmul.msk.bf16.vlgmr.msrb.gmra.mxu0 %vm609_vm3, %v638_v43 }
 0x1e3   : > { %860 = vmatpush.bf16.xpose.msrb.mxu0 %v851_v44 }
 0x1e7   : > { %v671_v45 = vpop.permute.xlu0 %670 }
 0x1e8   : > { %v676_v46 = vsel %vm609_vm3, %v671_v45, 0 }
 0x1e9   : > { %685 = vmatpush.bf16.xpose.msrb.mxu1 %v676_v46 }
 0x1f1   : > { %783 = vmatpush.bf16.xpose.msra.mxu1 %v774_v47 }
 0x1fa   : > { %665 = vrot.lane.b32.xlu1 %v664_v20, %s1564_s11 }
 0x254   : > { %v637_v52 = vpop.xlane.xlu1 %636 }
 0x255   : > { %1262 = vrcp.f32 %v637_v52 }
 0x25b   : > { %v1263_v53 = vpop.eup %1262 }
 0x25f   : > { %v655_v54 = vpop.f32.mrf.mxu0 }
 0x260   : > { %v660_v55 = vmul.f32 %v1263_v53, %v655_v54 }
 0x262   : > { %v661_v56 = vpack.c.bf16 %v660_v55, %v660_v55 }
 0x264   : > { %1128 = vmatmul.msk.bf16.vlgmr.msra.gmra.mxu0 %vm609_vm3, %v661_v56 }
 0x267   : > { %v657_v57 = vpop.f32.mrf.mxu0 }
 0x26c   : > { %v666_v58 = vpop.permute.xlu1 %665 }
 0x26d   : > { %1125 = vmatmul.msk.bf16.vlgmr.msrb.gmra.mxu1 %vm609_vm3, %v666_v58  ;;  %v1259_v58 = vld [vmem:[%s1873_s9] ss:$0 sm:$0xff] }
 0x274   : > { %1132 = vmatmul.msk.bf16.vlgmr.msrb.gmra.mxu0 %vm609_vm3, %v844_v49 }
 0x27d   : > { %1129 = vmatmul.msk.bf16.vlgmr.msra.gmra.mxu1 %vm609_vm3, %v767_v48 }
 0x2e1   : > { %v1799_v59 = vpop.f32.mrf.mxu0 }
 0x2e9   : > { %v764_v60 = vpop.f32.mrf.mxu0 }
 0x2ea   : > { %v687_v61 = vpop.f32.mrf.mxu1 }
 0x2eb   : > { %v691_v62 = vsel %vm609_vm3, %v687_v61, -inf }
 0x2ec   : > { %692 = vmax.xlane.f32.xlu0 %v691_v62 }
 0x2f1   : > { %v862_v63 = vpop.f32.mrf.mxu0 }
 0x2f2   : > { %v689_v0 = vpop.f32.mrf.mxu1  ;;  %v866_v1 = vsel %vm609_vm3, %v862_v63, -inf }
 0x2f3   : > { %867 = vmax.xlane.f32.xlu2 %v866_v1 }
 0x2f9   : > { %v864_v2 = vpop.f32.mrf.mxu0 }
 0x2fa   : > { %v785_v3 = vpop.f32.mrf.mxu1 }
 0x2fb   : > { %v789_v4 = vsel %vm609_vm3, %v785_v3, -inf }
 0x2fc   : > { %790 = vmax.xlane.f32.xlu1 %v789_v4 }
 0x300   : > { %799 = vrot.lane.b32.xlu0 %v703_v35, %s1562_s26  ;;  %s1476_s26 = scalar_lea.hbm %s1874_s10, 16 }
 0x301   : > { %p1478_p11 = scmp.lt.s32.totalorder %s1476_s26, %s1472_s23 }
 0x302   : > { %v787_v5 = vpop.f32.mrf.mxu1 }
 0x303   : > { %p1479_p12 = por %p1478_p11, %p1477_p10 }
 0x305   : > { %p1480_p13 = pnand %p1479_p12, %p1475_p9 }
 0x315   : > { %876 = vrot.lane.b32.xlu1 %v703_v35, %s1563_s30 }
 0x35f   : > { %v693_v6 = vpop.xlane.xlu0 %692 }
 0x360   : > { %v694_v7 = vsub.f32 %v687_v61, %v693_v6 }
 0x362   : > { %v695_v8 = vmul.f32 1.442695, %v694_v7 }
 0x364   : > { %1264 = vpow2.f32 %v695_v8 }
 0x366   : > { %v868_v9 = vpop.xlane.xlu2 %867 }
 0x367   : > { %v869_v10 = vsub.f32 %v862_v63, %v868_v9 }
 0x369   : > { %v870_v11 = vmul.f32 1.442695, %v869_v10 }
 0x36a   : > { %v1265_v12 = vpop.eup %1264 }
 0x36b   : > { %1266 = vpow2.f32 %v870_v11  ;;  %v697_v13 = vsel %vm609_vm3, %v1265_v12, 0.0  ;;  %v700_v14 = vpack.c.bf16 %v1265_v12, %v1265_v12 }
 0x36c   : > { %698 = vadd.xlane.f32.xlu2 %v697_v13 }
 0x36d   : > { %1126 = vmatmul.msk.bf16.vlgmr.msrb.gmra.mxu2 %vm609_vm3, %v700_v14 }
 0x36f   : > { %v791_v15 = vpop.xlane.xlu1 %790 }
 0x370   : > { %v792_v16 = vsub.f32 %v785_v3, %v791_v15 }
 0x371   : > { %v1267_v17 = vpop.eup %1266 }
 0x372   : > { %v793_v18 = vmul.f32 1.442695, %v792_v16  ;;  %v800_v19 = vpop.permute.xlu0 %799  ;;  %v872_v20 = vsel %vm609_vm3, %v1267_v17, 0.0  ;;  %v875_v27 = vpack.c.bf16 %v1267_v17, %v1267_v17 }
 0x373   : > { %v805_v21 = vsel %vm642_vm4, %v800_v19, 0  ;;  %873 = vadd.xlane.f32.xlu0 %v872_v20 }
 0x374   : > { %1268 = vpow2.f32 %v793_v18  ;;  %814 = vmatpush.bf16.msra.mxu2 %v805_v21 }
 0x378   : > { %913 = vmatpush.bf16.msrb.mxu2 %v904_v34 }
 0x37a   : > { %v1269_v22 = vpop.eup %1268 }
 0x37b   : > { %v798_v23 = vpack.c.bf16 %v1269_v22, %v1269_v22  ;;  %v795_v24 = vsel %vm609_vm3, %v1269_v22, 0.0 }
 0x37c   : > { %796 = vadd.xlane.f32.xlu2 %v795_v24 }
 0x37d   : > { %1130 = vmatmul.msk.bf16.vlgmr.msra.gmra.mxu2 %vm609_vm3, %v798_v23 }
 0x387   : > { %v877_v25 = vpop.permute.xlu1 %876 }
 0x388   : > { %v882_v26 = vsel %vm642_vm4, %v877_v25, 0 }
 0x389   : > { %891 = vmatpush.bf16.msrb.mxu1 %v882_v26 }
 0x38c   : > { %1133 = vmatmul.msk.bf16.vlgmr.msrb.gmra.mxu1 %vm609_vm3, %v875_v27 }
 0x3df   : > { %v699_v32 = vpop.xlane.xlu2 %698 }
 0x3e0   : > { %1270 = vrcp.f32 %v699_v32 }
 0x3e6   : > { %v1271_v35 = vpop.eup %1270  ;;  %v874_v42 = vpop.xlane.xlu0 %873 }
 0x3ef   : > { %v797_v39 = vpop.xlane.xlu2 %796 }
 0x3f0   : > { %v721_v36 = vpop.f32.mrf.mxu2  ;;  %1272 = vrcp.f32 %v797_v39 }
 0x3f1   : > { %v726_v37 = vmul.f32 %v1271_v35, %v721_v36  ;;  %1274 = vrcp.f32 %v874_v42 }
 0x3f3   : > { %v727_v38 = vpack.c.bf16 %v726_v37, %v726_v37 }
 0x3f5   : > { %1127 = vmatmul.msk.bf16.vlgmr.msrb.gmra.mxu3 %vm609_vm3, %v727_v38 }
 0x3f6   : > { %v1273_v41 = vpop.eup %1272 }
 0x3f7   : > { %v1275_v47 = vpop.eup %1274 }
 0x3f8   : > { %v723_v40 = vpop.f32.mrf.mxu2 }
 0x400   : > { %v816_v43 = vpop.f32.mrf.mxu2 }
 0x401   : > { %v821_v44 = vmul.f32 %v1273_v41, %v816_v43 }
 0x403   : > { %v822_v45 = vpack.c.bf16 %v821_v44, %v821_v44 }
 0x405   : > { %1131 = vmatmul.msk.bf16.vlgmr.msra.gmra.mxu3 %vm609_vm3, %v822_v45 }
 0x408   : > { %v818_v46 = vpop.f32.mrf.mxu2 }
 0x409   : > { %v893_v48 = vpop.f32.mrf.mxu1 }
 0x40a   : > { %v898_v49 = vmul.f32 %v1275_v47, %v893_v48 }
 0x40c   : > { %v899_v50 = vpack.c.bf16 %v898_v49, %v898_v49 }
 0x40e   : > { %1134 = vmatmul.msk.bf16.vlgmr.msrb.gmra.mxu2 %vm609_vm3, %v899_v50 }
 0x411   : > { %v895_v51 = vpop.f32.mrf.mxu1 }
 0x478   : > { %v743_v52 = vpop.f32.mrf.mxu3 }
 0x479   : > { %v763_v55 = vadd.f32 %v1799_v59, %v743_v52 }
 0x480   : > { %v745_v53 = vpop.f32.mrf.mxu3 }
 0x488   : > { %v838_v54 = vpop.f32.mrf.mxu3 }
 0x489   : > { %v842_v56 = vadd.f32 %v838_v54, %v763_v55 }
 0x490   : > { %v840_v57 = vpop.f32.mrf.mxu3 }
 0x491   : > { %v915_v60 = vpop.f32.mrf.mxu2 }
 0x492   : > { %v919_v61 = vadd.f32 %v915_v60, %v842_v56 }
 0x494   : > { %v924_v62 = vadd.f32 %v1259_v58, %v919_v61 }
 0x496   : > { %925 = vst.msk [vmem:[%s498_s6] sm:$0xff] %vm585_vm1, %v924_v62 }
 0x497   : > { %1483 = shalt.err (!%p1480_p13)
}
 0x498   : > { %1163 = dma.vmem_to_hbm [thread:$0]  (%p1712_p2), %s941_s13, 128, %s943_s15, %s927_s16  }
 0x499   : > { %v917_v59 = vpop.f32.mrf.mxu2 }
 0x49a PF: > { %s1904_s8 = sld [smem:[#allocation22_spill]]  ;;  %p1186_p0 = pnand %p1091_p6, %p1719_p5 }
 0x49c   : > { %p1187_p4 = pneg %p1186_p0 }
 0x4a0   : > { %s954_s25 = sand.u32 1, %s1904_s8  }
 0x4a1   : > { %s955_s21 = scalar_lea.sflag [#allocation6], %s954_s25 }
 0x4a2   : > { %1529 = dma.done.wait (%p1187_p4), %s955_s21, 128  }
 0x4a3   : > { %1531 = vsyncadd (%p1187_p4), %s955_s21, 4294967168  ;;  %s31_s18 = sadd.s32 1, %s1554_s18   ;;  %s1906_s4 = sld [smem:[#allocation23_spill]] }
 0x4a4   : > { %p28_p7 = scmp.ge.s32.totalorder %s31_s18, 4   ;;  %s1907_s15 = sld [smem:[#allocation27_spill]] }
 0x4a5   : > { %s1908_s16 = sld [smem:[#allocation24_spill]]  ;;  %s1910_s13 = smov %s1538_s14 }
 0x4a6   : > { %s1909_s17 = sld [smem:[#allocation25_spill]]  ;;  %30 = sbr.rel (!%p28_p7) target bundleno = 15 (0xf), region = 138 }
 0x4a9   : > { %s1911_s14 = smov %s1906_s4 }
 0x4ab   :  { %961 = vsyncpa [#allocation5], 1 }
 0x4ac   :  { %963 = vsyncpa [#allocation5 + $0x1], 1 }
 0x4ad   :  { %964 = vsyncpa [#allocation8], 1 }
 0x4ae   :  { %966 = vsyncpa [#allocation8 + $0x1], 1 }
 0x4af   :  { %967 = vsyncpa [#allocation11], 1 }
 0x4b0   :  { %968 = vsyncpa [#allocation14], 1 }
 0x4b1   :  { %969 = vsyncpa [#allocation6], 1 }
 0x4b2   :  { %971 = vsyncpa [#allocation6 + $0x1], 1 }

</bundles_post_ra>
